<compile_context>
chip_gen: v6e
topology: v6e:2x2x1
jax: 0.10.0
libtpu: 0.0.40
codegen_flags: <defaults>
</compile_context>

<pallas_src>
from typing import NamedTuple, Optional

import jax
import jax.numpy as jnp
from jax.experimental import pallas as pl
from jax.experimental.pallas import tpu as pltpu


# ---------------------------------------------------------------------------
# Kernel body
# ---------------------------------------------------------------------------
def _swiglu_kernel(x_ref, w13_ref, w2_ref, o_ref, acc_ref):
    """One (token-tile, ffn-tile) grid step of the fused SwiGLU MLP.

    x_ref   : (tm, H)       activation tile (compute dtype, e.g. bf16)
    w13_ref : (H, 2*tf)     fused [w1^T tile | w3^T tile] gate/up weights
    w2_ref  : (tf, H)       w2^T tile (down projection)
    o_ref   : (tm, H)       output tile (written on the last ffn step)
    acc_ref : (tm, H) f32   VMEM accumulator, resident across the ffn axis
    """
    k = pl.program_id(1)

    @pl.when(k == 0)
    def _():
        acc_ref[...] = jnp.zeros_like(acc_ref)

    tf = w2_ref.shape[0]

    # Fused gate/up projection: one wide MXU pass instead of two.
    gu = jnp.dot(x_ref[...], w13_ref[...], preferred_element_type=jnp.float32)
    gate = gu[:, :tf]
    up = gu[:, tf:]

    # SwiGLU: silu(gate) * up   (VPU + EUP, in f32 -- rides free under the MXU)
    hidden = gate * jax.nn.sigmoid(gate) * up

    # Down projection, accumulated in f32 across ffn tiles.
    acc_ref[...] += jnp.dot(hidden.astype(w2_ref.dtype), w2_ref[...],
                            preferred_element_type=jnp.float32)

    @pl.when(k == pl.num_programs(1) - 1)
    def _():
        o_ref[...] = acc_ref[...].astype(o_ref.dtype)


# ---------------------------------------------------------------------------
# Tiling / VMEM helpers
# ---------------------------------------------------------------------------
def _round_up(x, m):
    return ((x + m - 1) // m) * m


def _pick_tile(total, target, multiple):
    """Largest tile <= target that divides `total` and is a multiple of
    `multiple`; falls back to the full axis (always a legal block)."""
    if total <= target:
        return total
    t = (target // multiple) * multiple
    while t >= multiple:
        if total % t == 0:
            return t
        t -= multiple
    # TODO(synk): for F not divisible by 128 this returns the full axis and
    # may exceed the VMEM budget; such shapes do not occur in Mixtral.
    return total


def _physical_vmem_bytes():
    """Per-core physical VMEM (v5e/v6e: 128 MiB, v7x: 64 MiB)."""
    try:
        info = pltpu.get_tpu_info()
        cap = int(getattr(info, "vmem_capacity_bytes", 0) or 0)
        if cap > 0:
            return cap
    except Exception:
        pass
    return 64 << 20  # conservative fallback (v7x per-TC VMEM)


def _default_tiles(ffn_dim, vmem_bytes):
    """Generation-aware (tm, tf) defaults.

    128 MiB chips (v5e/v6e): tf=1024 halves the ffn step count (less per-step
    overhead, longer weight DMAs); tm=512 roughly balances DMA vs MXU on v6e.
    64 MiB chips (v7x): tm=512/tf=512 keeps the double-buffered footprint at
    ~48 MiB (Mixtral H=4096) -- do NOT scale to 1024 tiles here.
    """
    if vmem_bytes >= (100 << 20):
        tm_target, tf_target = 512, 1024
    else:
        tm_target, tf_target = 512, 512
    return tm_target, _pick_tile(ffn_dim, tf_target, 128)


def _estimate_vmem_bytes(tm, tf, H, itemsize):
    """Double-buffered input/output tiles + resident f32 accumulator."""
    tiles = tm * H + H * (2 * tf) + tf * H + tm * H
    return 2 * tiles * itemsize + tm * H * 4


# ---------------------------------------------------------------------------
# One-time weight preparation (hoist out of the forward path!)
# ---------------------------------------------------------------------------
class MixtralMLPWeights(NamedTuple):
    w13: jax.Array   # (H, 2*F) compute dtype, per-tile fused [w1^T | w3^T]
    w2t: jax.Array   # (F, H)   compute dtype (w2 transposed)
    tf: int          # ffn tile size the fusion was built for


def prepare_mixtral_mlp_weights(w1, w2, w3, *, tf: Optional[int] = None,
                                compute_dtype=jnp.bfloat16):
    """Build fused, transposed, compute-dtype weights.

    Call ONCE at weight-load time and cache the result: this moves ~3*H*F
    elements of HBM traffic which must not run on every forward call.

    w1, w3: (F, H); w2: (H, F)  (PyTorch nn.Linear layout).
    """
    F_, H = w1.shape
    if tf is None:
        tf = _default_tiles(F_, _physical_vmem_bytes())[1]
    tf = _pick_tile(F_, tf, 128)
    nk = F_ // tf
    cd = compute_dtype

    w1t = w1.T.astype(cd)                      # (H, F)
    w3t = w3.T.astype(cd)                      # (H, F)
    # Tile k of w13 is [w1t_k | w3t_k] -> one wide gate/up MXU pass per step.
    w13 = jnp.concatenate(
        [w1t.reshape(H, nk, tf), w3t.reshape(H, nk, tf)], axis=2
    ).reshape(H, 2 * F_)
    w2t = w2.T.astype(cd)                      # (F, H)
    return MixtralMLPWeights(w13=w13, w2t=w2t, tf=tf)


# ---------------------------------------------------------------------------
# Hot-path forward
# ---------------------------------------------------------------------------
def mixtral_mlp_apply(hidden_states, weights: MixtralMLPWeights, *,
                      tm: Optional[int] = None):
    """hidden_states: (T, H). Returns (T, H) in hidden_states.dtype."""
    T, H = hidden_states.shape
    w13, w2t, tf = weights
    F_ = w2t.shape[0]
    assert w13.shape == (H, 2 * F_)
    assert F_ % tf == 0, (F_, tf)
    nk = F_ // tf

    cd = w13.dtype
    out_dtype = hidden_states.dtype
    itemsize = jnp.dtype(cd).itemsize
    row_mult = 16 if itemsize == 2 else 8

    phys = _physical_vmem_bytes()
    budget = phys - (6 << 20)

    # --- token tile selection --------------------------------------------
    if tm is None:
        tm = _default_tiles(F_, phys)[0]
        # Shrink the token tile (the only free knob once tf is baked into the
        # prepared weights) until the double-buffered footprint fits VMEM.
        while tm > row_mult and _estimate_vmem_bytes(tm, tf, H, itemsize) > budget:
            tm //= 2
    tm = max(_round_up(tm, row_mult), row_mult)
    # Small batches: a single token tile with minimal padding.
    tm = min(tm, _round_up(T, row_mult))

    # Pad the token axis up to the token tile so awkward T never falls into a
    # many-tiny-tiles regime that re-streams the full weight set per tile.
    Tp = _round_up(T, tm)
    x = hidden_states.astype(cd)
    if Tp != T:
        x = jnp.pad(x, ((0, Tp - T), (0, 0)))
    ntok = Tp // tm

    # --- VMEM limit: always set; >= footprint; <= physical ----------------
    est = _estimate_vmem_bytes(tm, tf, H, itemsize)
    vmem_limit = est + (8 << 20)                 # footprint + pipeline slack
    vmem_limit = max(vmem_limit, 32 << 20)       # never below the common default
    vmem_limit = min(vmem_limit, phys - (4 << 20))   # generation-aware clamp
    vmem_limit = max(vmem_limit, est)            # but never below the footprint
    vmem_limit = int(min(vmem_limit, phys))

    # --- serpentine FFN traversal -----------------------------------------
    # Even token tiles walk k = 0..nk-1, odd tiles walk nk-1..0, so the weight
    # tile at a token-tile boundary is reused without a re-fetch.
    def _serp(i, k):
        return jnp.where(i % 2 == 0, k, nk - 1 - k)

    def x_map(i, k):
        return (i, 0)

    def w13_map(i, k):
        return (0, _serp(i, k))

    def w2_map(i, k):
        return (_serp(i, k), 0)

    out = pl.pallas_call(
        _swiglu_kernel,
        out_shape=jax.ShapeDtypeStruct((Tp, H), out_dtype),
        grid_spec=pltpu.PrefetchScalarGridSpec(
            num_scalar_prefetch=0,
            grid=(ntok, nk),                              # ffn axis innermost
            in_specs=[
                pl.BlockSpec((tm, H), x_map),             # x tile
                pl.BlockSpec((H, 2 * tf), w13_map),       # [w1t|w3t] tile
                pl.BlockSpec((tf, H), w2_map),            # w2t tile
            ],
            out_specs=pl.BlockSpec((tm, H), x_map),
            scratch_shapes=[pltpu.VMEM((tm, H), jnp.float32)],
        ),
        compiler_params=pltpu.CompilerParams(
            dimension_semantics=("parallel", "arbitrary"),
            vmem_limit_bytes=vmem_limit,
        ),
    )(x, w13, w2t)

    return out[:T] if Tp != T else out


def mixtral_block_sparse_top2_mlp(hidden_states, w1, w2, w3, *,
                                  tm=None, tf=None,
                                  compute_dtype=jnp.bfloat16):
    """One-shot convenience wrapper (prep + apply).

    NOTE: in real use call prepare_mixtral_mlp_weights() once at weight-load
    time and reuse the result with mixtral_mlp_apply(); the transpose/concat
    prep is HBM traffic comparable to the kernel itself and must not run per
    forward.
    """
    prepared = prepare_mixtral_mlp_weights(w1, w2, w3, tf=tf,
                                           compute_dtype=compute_dtype)
    return mixtral_mlp_apply(hidden_states, prepared, tm=tm)


# ---------------------------------------------------------------------------
# Self-test
# ---------------------------------------------------------------------------
if __name__ == "__main__":
    # Small but TPU-friendly shapes (lane-dense H, multi-step grid).
    hidden_dim = 128
    ffn_dim = 1024
    num_tokens = 128

    key = jax.random.PRNGKey(0)
    kx, k1, k2, k3 = jax.random.split(key, 4)

    lim1 = hidden_dim ** -0.5   # nn.Linear init range for w1/w3 (fan_in = H)
    lim2 = ffn_dim ** -0.5      # nn.Linear init range for w2   (fan_in = F)

    x = jax.random.normal(kx, (num_tokens, hidden_dim), dtype=jnp.float32)
    w1 = jax.random.uniform(k1, (ffn_dim, hidden_dim), jnp.float32, -lim1, lim1)
    w2 = jax.random.uniform(k2, (hidden_dim, ffn_dim), jnp.float32, -lim2, lim2)
    w3 = jax.random.uniform(k3, (ffn_dim, hidden_dim), jnp.float32, -lim1, lim1)

    # Reference in f32, with the same bf16 quantization of inputs/weights.
    xb = x.astype(jnp.bfloat16).astype(jnp.float32)
    w1b = w1.astype(jnp.bfloat16).astype(jnp.float32)
    w2b = w2.astype(jnp.bfloat16).astype(jnp.float32)
    w3b = w3.astype(jnp.bfloat16).astype(jnp.float32)
    ref = (jax.nn.silu(xb @ w1b.T) * (xb @ w3b.T)) @ w2b.T

    # 1) One-time weight prep (hoisted), small tiles to force a multi-step
    #    serpentine grid (2 token tiles x 4 ffn tiles) through the
    #    init/accumulate/finalize and even/odd token-tile paths.
    prepared_small = prepare_mixtral_mlp_weights(w1, w2, w3, tf=256)
    jax.block_until_ready(prepared_small.w13)

    out1 = jax.block_until_ready(mixtral_mlp_apply(x, prepared_small, tm=64))
    assert out1.shape == (num_tokens, hidden_dim)
    err1 = float(jnp.max(jnp.abs(out1 - ref)))
    assert jnp.allclose(out1, ref, atol=2e-2, rtol=2e-2), f"small-tile mismatch: {err1}"

    # 2) Device-aware default tiling path via the convenience wrapper.
    out2 = jax.block_until_ready(mixtral_block_sparse_top2_mlp(x, w1, w2, w3))
    assert out2.shape == (num_tokens, hidden_dim)
    err2 = float(jnp.max(jnp.abs(out2 - ref)))
    assert jnp.allclose(out2, ref, atol=2e-2, rtol=2e-2), f"default-tile mismatch: {err2}"

    print("KERNEL_OK")
</pallas_src>

<mosaic_0001>
module attributes {stable_mosaic.version = 11 : i64} {
  func.func @_swiglu_kernel(%arg0: i32, %arg1: i32, %arg2: memref<64x128xbf16, #tpu.memory_space<vmem>>, %arg3: memref<128x512xbf16, #tpu.memory_space<vmem>>, %arg4: memref<256x128xbf16, #tpu.memory_space<vmem>>, %arg5: memref<64x128xf32, #tpu.memory_space<vmem>>, %arg6: memref<64x128xf32, #tpu.memory_space<vmem>>) attributes {dimension_semantics = [#tpu.dimension_semantics<parallel>, #tpu.dimension_semantics<arbitrary>], iteration_bounds = array<i64: 2, 4>, scalar_prefetch = 0 : i64, scratch_operands = 1 : i64, tpu.core_type = #tpu.core_type<tc>, window_params = [{transform_indices = @transform_0, window_bounds = array<i64: 64, 128>}, {transform_indices = @transform_1, window_bounds = array<i64: 128, 512>}, {transform_indices = @transform_2, window_bounds = array<i64: 256, 128>}, {transform_indices = @transform_3, window_bounds = array<i64: 64, 128>}]} {
    %c0_i32 = arith.constant 0 : i32
    %0 = arith.cmpi eq, %arg1, %c0_i32 : i32
    %1 = arith.extui %0 : i1 to i32
    %c0_i32_0 = arith.constant 0 : i32
    %2 = arith.cmpi ne, %1, %c0_i32_0 : i32
    scf.if %2 {
      %cst_13 = arith.constant 0.000000e+00 : f32
      %24 = vector.broadcast %cst_13 : f32 to vector<64x128xf32>
      %c0_14 = arith.constant 0 : index
      %c0_15 = arith.constant 0 : index
      %25 = vector.load %arg6[%c0_14, %c0_15] : memref<64x128xf32, #tpu.memory_space<vmem>>, vector<64x128xf32>
      tpu.vector_store %arg6[%c0_14, %c0_15], %24 {strides = array<i32>} : memref<64x128xf32, #tpu.memory_space<vmem>>, vector<64x128xf32>,
    } else {
    }
    %c0 = arith.constant 0 : index
    %c0_1 = arith.constant 0 : index
    %3 = vector.load %arg2[%c0, %c0_1] : memref<64x128xbf16, #tpu.memory_space<vmem>>, vector<64x128xbf16>
    %c0_2 = arith.constant 0 : index
    %c0_3 = arith.constant 0 : index
    %4 = vector.load %arg3[%c0_2, %c0_3] : memref<128x512xbf16, #tpu.memory_space<vmem>>, vector<128x512xbf16>
    %cst = arith.constant dense<0.000000e+00> : vector<64x512xf32>
    %5 = tpu.matmul %3, %4, %cst {dimension_numbers = #tpu.dot_dimension_numbers<[1], [0], [0], [1], [0, 0, 1, 1], [], []>} : vector<64x128xbf16>, vector<128x512xbf16>, vector<64x512xf32> -> vector<64x512xf32>
    %6 = vector.extract_strided_slice %5 {offsets = [0, 0], sizes = [64, 256], strides = [1, 1]} : vector<64x512xf32> to vector<64x256xf32>
    %7 = vector.extract_strided_slice %5 {offsets = [0, 256], sizes = [64, 256], strides = [1, 1]} : vector<64x512xf32> to vector<64x256xf32>
    %8 = arith.negf %6 : vector<64x256xf32>
    %9 = math.exp %8 : vector<64x256xf32>
    %cst_4 = arith.constant 1.000000e+00 : f32
    %10 = vector.broadcast %cst_4 : f32 to vector<64x256xf32>
    %11 = arith.addf %10, %9 : vector<64x256xf32>
    %12 = arith.divf %10, %11 : vector<64x256xf32>
    %13 = arith.mulf %6, %12 : vector<64x256xf32>
    %14 = arith.mulf %13, %7 : vector<64x256xf32>
    %c0_5 = arith.constant 0 : index
    %c0_6 = arith.constant 0 : index
    %15 = vector.load %arg6[%c0_5, %c0_6] : memref<64x128xf32, #tpu.memory_space<vmem>>, vector<64x128xf32>
    %16 = arith.truncf %14 : vector<64x256xf32> to vector<64x256xbf16>
    %c0_7 = arith.constant 0 : index
    %c0_8 = arith.constant 0 : index
    %17 = vector.load %arg4[%c0_7, %c0_8] : memref<256x128xbf16, #tpu.memory_space<vmem>>, vector<256x128xbf16>
    %cst_9 = arith.constant dense<0.000000e+00> : vector<64x128xf32>
    %18 = tpu.matmul %16, %17, %cst_9 {dimension_numbers = #tpu.dot_dimension_numbers<[1], [0], [0], [1], [0, 0, 1, 1], [], []>} : vector<64x256xbf16>, vector<256x128xbf16>, vector<64x128xf32> -> vector<64x128xf32>
    %19 = arith.addf %15, %18 : vector<64x128xf32>
    %c0_10 = arith.constant 0 : index
    %c0_11 = arith.constant 0 : index
    %20 = vector.load %arg6[%c0_10, %c0_11] : memref<64x128xf32, #tpu.memory_space<vmem>>, vector<64x128xf32>
    tpu.vector_store %arg6[%c0_10, %c0_11], %19 {strides = array<i32>} : memref<64x128xf32, #tpu.memory_space<vmem>>, vector<64x128xf32>,
    %c3_i32 = arith.constant 3 : i32
    %21 = arith.cmpi eq, %arg1, %c3_i32 : i32
    %22 = arith.extui %21 : i1 to i32
    %c0_i32_12 = arith.constant 0 : i32
    %23 = arith.cmpi ne, %22, %c0_i32_12 : i32
    scf.if %23 {
      %c0_13 = arith.constant 0 : index
      %c0_14 = arith.constant 0 : index
      %24 = vector.load %arg6[%c0_13, %c0_14] : memref<64x128xf32, #tpu.memory_space<vmem>>, vector<64x128xf32>
      %c0_15 = arith.constant 0 : index
      %c0_16 = arith.constant 0 : index
      %25 = vector.load %arg5[%c0_15, %c0_16] : memref<64x128xf32, #tpu.memory_space<vmem>>, vector<64x128xf32>
      tpu.vector_store %arg5[%c0_15, %c0_16], %24 {strides = array<i32>} : memref<64x128xf32, #tpu.memory_space<vmem>>, vector<64x128xf32>,
    } else {
    }
    return
  }
  func.func @transform_0(%arg0: i32, %arg1: i32) -> (i32, i32) {
    %c0_i32 = arith.constant 0 : i32
    %c0_i32_0 = arith.constant 0 : i32
    return %arg0, %c0_i32 : i32, i32
  }
  func.func @transform_1(%arg0: i32, %arg1: i32) -> (i32, i32) {
    %c2_i32 = arith.constant 2 : i32
    %c0_i32 = arith.constant 0 : i32
    %0 = arith.cmpi eq, %c2_i32, %c0_i32 : i32
    %c1_i32 = arith.constant 1 : i32
    %1 = arith.select %0, %c1_i32, %c2_i32 : i32
    %2 = arith.remsi %arg0, %1 : i32
    %c0_i32_0 = arith.constant 0 : i32
    %3 = arith.cmpi ne, %2, %c0_i32_0 : i32
    %c0_i32_1 = arith.constant 0 : i32
    %4 = arith.cmpi slt, %2, %c0_i32_1 : i32
    %c0_i32_2 = arith.constant 0 : i32
    %5 = arith.cmpi slt, %1, %c0_i32_2 : i32
    %6 = arith.xori %4, %5 : i1
    %7 = arith.andi %6, %3 : i1
    %8 = arith.addi %2, %1 : i32
    %9 = arith.select %7, %8, %2 : i32
    %c0_i32_3 = arith.constant 0 : i32
    %10 = arith.cmpi eq, %9, %c0_i32_3 : i32
    %c3_i32 = arith.constant 3 : i32
    %11 = arith.subi %c3_i32, %arg1 : i32
    %12 = arith.select %10, %arg1, %11 : i32
    %c0_i32_4 = arith.constant 0 : i32
    %c0_i32_5 = arith.constant 0 : i32
    return %c0_i32_4, %12 : i32, i32
  }
  func.func @transform_2(%arg0: i32, %arg1: i32) -> (i32, i32) {
    %c2_i32 = arith.constant 2 : i32
    %c0_i32 = arith.constant 0 : i32
    %0 = arith.cmpi eq, %c2_i32, %c0_i32 : i32
    %c1_i32 = arith.constant 1 : i32
    %1 = arith.select %0, %c1_i32, %c2_i32 : i32
    %2 = arith.remsi %arg0, %1 : i32
    %c0_i32_0 = arith.constant 0 : i32
    %3 = arith.cmpi ne, %2, %c0_i32_0 : i32
    %c0_i32_1 = arith.constant 0 : i32
    %4 = arith.cmpi slt, %2, %c0_i32_1 : i32
    %c0_i32_2 = arith.constant 0 : i32
    %5 = arith.cmpi slt, %1, %c0_i32_2 : i32
    %6 = arith.xori %4, %5 : i1
    %7 = arith.andi %6, %3 : i1
    %8 = arith.addi %2, %1 : i32
    %9 = arith.select %7, %8, %2 : i32
    %c0_i32_3 = arith.constant 0 : i32
    %10 = arith.cmpi eq, %9, %c0_i32_3 : i32
    %c3_i32 = arith.constant 3 : i32
    %11 = arith.subi %c3_i32, %arg1 : i32
    %12 = arith.select %10, %arg1, %11 : i32
    %c0_i32_4 = arith.constant 0 : i32
    %c0_i32_5 = arith.constant 0 : i32
    return %12, %c0_i32_4 : i32, i32
  }
  func.func @transform_3(%arg0: i32, %arg1: i32) -> (i32, i32) {
    %c0_i32 = arith.constant 0 : i32
    %c0_i32_0 = arith.constant 0 : i32
    return %arg0, %c0_i32 : i32, i32
  }
}

</mosaic_0001>

<bundles_post_ra>
// kernel: tpu_custom_call.1
= control target key start
LH: loop header
LB: loop body
LE: loop exit
PB: predicated region body
PF: predicated region fallthrough
CT: control target
= control target key end

     0   :  { %s2412_s0 = inlined_call_operand.hbm [shape: bf16[128,128], index: 0, kind: input, shape index: {}]   ;;  %s2413_s1 = inlined_call_operand.hbm [shape: bf16[128,2048], index: 1, kind: input, shape index: {}]   ;;  %s2414_s2 = inlined_call_operand.hbm [shape: bf16[1024,128], index: 2, kind: input, shape index: {}]   ;;  %s2415_s3 = inlined_call_operand.hbm [shape: f32[128,128], index: 3, kind: output, shape index: {}]  }
   0x1   :  { %2426 = sst [smem:[#allocation23_spill]] %s2412_s0 }
   0x2   :  { %2427 = sst [smem:[#allocation24_spill]] %s2413_s1 }
   0x3   :  { %2428 = sst [smem:[#allocation25_spill]] %s2415_s3 }
   0x4   :  { %8 = vsyncpa [#allocation4], 0 }
   0x5   :  { %10 = vsyncpa [#allocation4 + $0x1], 0 }
   0x6   :  { %11 = vsyncpa [#allocation7], 0 }
   0x7   :  { %13 = vsyncpa [#allocation7 + $0x1], 0 }
   0x8   :  { %14 = vsyncpa [#allocation5], 0 }
   0x9   :  { %16 = vsyncpa [#allocation5 + $0x1], 0  ;;  %s1966_s12 = smov 0   ;;  %s1968_s13 = smov 0  }
   0xa   :  { %s1970_s14 = smov 0   ;;  %s1972_s15 = smov 0  }
   0xb   :  { %s1974_s16 = smov 0   ;;  %s1976_s17 = smov 0  }
   0xc   :  { %s1978_s18 = smov 0   ;;  %s1980_s19 = smov 0  }
   0xd   :  { %s1982_s20 = smov 0   ;;  %s1984_s21 = smov 0  }
   0xe   :  { %s1986_s22 = smov 0  }
   0xf LB: > { %2429 = sst [smem:[#allocation13_spill]] %s1899_s14  ;;  %s31_s23 = sadd.s32 1, %s1923_s20  ;;  %s1931_s22 = sphi %s1986_s22, %s22_s22   ;;  %s1927_s21 = sphi %s1984_s21, %s2464_s21   ;;  %s1923_s20 = sphi %s1982_s20, %s2463_s20   ;;  %s1919_s19 = sphi %s1980_s19, %s2462_s19   ;;  %s1915_s18 = sphi %s1978_s18, %s2469_s18   ;;  %s1911_s17 = sphi %s1976_s17, %s2460_s17   ;;  %s1907_s16 = sphi %s1974_s16, %s2468_s16   ;;  %s1903_s15 = sphi %s1972_s15, %s2467_s15   ;;  %s1899_s14 = sphi %s1970_s14, %s2458_s14   ;;  %s1895_s13 = sphi %s1968_s13, %s2466_s13   ;;  %s1891_s12 = sphi %s1966_s12, %s2465_s12  }
  0x10   : > { %2430 = sst [smem:[#allocation14_spill]] %s1911_s17  ;;  %s34_s24 = sadd.s32 1, %s1927_s21 }
  0x11   : > { %2431 = sst [smem:[#allocation15_spill]] %s1919_s19  ;;  %p32_p0 = scmp.ge.s32.totalorder %s31_s23, 4 }
  0x12   : > { %2432 = sst [smem:[#allocation16_spill]] %s1923_s20  ;;  %p49_p1 = scmp.eq.s32.totalorder %s1931_s22, 0 }
  0x13   : > { %2433 = sst [smem:[#allocation17_spill]] %s1927_s21  ;;  %s65_s25 = ssub.s32 0, %s1927_s21 }
  0x14   : > { %s2471_s23 = smov (%p32_p0, %s31_s23), 0  ;;  %s2473_s24 = smov (!%p32_p0, %s34_s24), %s1927_s21 }
  0x15   : > { %2434 = sst [smem:[#allocation18_spill]] %s2471_s23  ;;  %s1301_s26 = smin.u32 %s1927_s21, %s65_s25 }
  0x16   : > { %s77_s27 = ssub.s32 3, %s1923_s20  ;;  %p36_p2 = scmp.ge.s32.totalorder %s2473_s24, 2 }
  0x17   : > { %s67_s28 = sand.u32 1, %s1301_s26   ;;  %s92_s29 = ssub.s32 3, %s2471_s23 }
  0x18   : > { %s2475_s24 = smov (%p36_p2, %s2473_s24), 0  ;;  %p1303_p3 = scmp.lt.s32.totalorder %s67_s28, 0 }
  0x19   : > { %2435 = sst [smem:[#allocation19_spill]] %s2475_s24  ;;  %s80_s30 = ssub.s32 0, %s2475_s24 }
  0x1a   : > { %s74_s4 = sadd.s32 2, %s67_s28  ;;  %s1304_s5 = smin.u32 %s80_s30, %s2475_s24 }
  0x1b   : > { %s97_s6 = sadd.s32 1, %s1899_s14  ;;  %s2477_s4 = smov (!%p1303_p3, %s74_s4), %s67_s28 }
  0x1c   : > { %s82_s7 = sand.u32 1, %s1304_s5   ;;  %p104_p4 = scmp.ne.s32.totalorder %s1899_s14, %s1895_s13 }
  0x1d   : > { %p76_p5 = scmp.eq.s32.totalorder %s2477_s4, 0  ;;  %p1306_p6 = scmp.lt.s32.totalorder %s82_s7, 0 }
  0x1e   : > { %s89_s9 = sadd.s32 2, %s82_s7  ;;  %p2043_p7 = por %p104_p4, %p49_p1 }
  0x1f   : > { %s2039_s8 = scalar_select %p76_p5, %s1923_s20, %s77_s27 }
  0x20   : > { %p110_p8 = scmp.ne.s32.totalorder %s1895_s13, %s1891_s12  ;;  %s2479_s9 = smov (!%p1306_p6, %s89_s9), %s82_s7 }
  0x21   : > { %p1492_p9 = scmp.lt.s32.totalorder %s1931_s22, 8  ;;  %p91_p10 = scmp.eq.s32.totalorder %s2479_s9, 0 }
  0x22   : > { %s237_s11 = sand.u32 1, %s1931_s22   ;;  %s2419_s25 = sand.u32 1, %s1899_s14  }
  0x23   : > { %s93_s26 = scalar_select %p91_p10, %s2471_s23, %s92_s29 }
  0x24   : > { %s1318_s27 = sshll.u32 %s2419_s25, 8  ;;  %s1411_s28 = sshll.u32 %s2039_s8, 8 }
  0x25   : > { %s94_s30 = ssub.s32 %s2039_s8, %s93_s26  ;;  %s2437_s1 = sld [smem:[#allocation24_spill]] }
  0x26   : > { %p95_p11 = scmp.eq.s32.totalorder %s94_s30, 0  ;;  %s241_s3 = scalar_lea.vmem [#allocation6], %s1318_s27 }
  0x27   : > { %s263_s19 = sshll.u32 %s241_s3, 4  ;;  %p2066_p12 = pnand %p1492_p9, %p2043_p7  ;;  %s264_s19 = int_to_ptr.vmem [resolvable:$true] %s263_s19 }
  0x28   : > { %s2071_s29 = scalar_select %p95_p11, %s1899_s14, %s97_s6  }
  0x29   : > { %p1330_p13 = scmp.ge.s32.totalorder %s1931_s22, 1  ;;  %s2074_s9 = scalar_lea.sflag [#allocation7], %s237_s11 }
  0x2a   : > { %2439 = sst [smem:[#allocation20_spill]] %s2071_s29  ;;  %p2418_p0 = pneg %p2066_p12 }
  0x2b   : > { %s2060_s20 = scalar_lea.hbm %s2437_s1, %s1411_s28  ;;  %s1736_s26 = scalar_lea.vmem %s264_s19, 4096 }
  0x2c   : > { %p1737_p2 = scmp.ne.s32.totalorder %s264_s19, %s1736_s26  ;;  %s1933_s3 = smov [#allocation6]  }
  0x2d   : > { %s1741_s10 = sshll.u32 %s1933_s3, 4  ;;  %s1742_s10 = int_to_ptr.vmem [resolvable:$false] %s1741_s10 }
  0x2e   : > { %p1739_p3 = pnand %p1737_p2, %p2418_p0  ;;  %s1743_s27 = scalar_lea.vmem %s1742_s10, 8192 }
  0x2f   : > { %p1744_p5 = scmp.lt.s32.totalorder %s264_s19, %s1742_s10  ;;  %p1745_p6 = scmp.lt.s32.totalorder %s1743_s27, %s1736_s26 }
  0x30   : > { %p1740_p4 = pneg %p1739_p3 }
  0x31   : > { %p1746_p7 = por %p1745_p6, %p1744_p5 }
  0x33   : > { %p1747_p10 = pnand %p1746_p7, %p1740_p4 }
  0x35   : > { %1750 = shalt.err (!%p1747_p10)
}
  0x36   : > { %s1934_s6 = smov 1024   ;;  %s1935_s11 = smov 256  }
  0x37   : > { %s1936_s28 = smov 16   ;;  %p307_p11 = scmp.lt.s32.totalorder %s1931_s22, 9 }
  0x38   : > { %1484 = dma.hbm_to_vmem [thread:$0]  (!%p2066_p12), %s2060_s20, 4096, %s264_s19, %s2074_s9, %s1934_s6, %s1935_s11, %s1936_s28  }
  0x39   : > { %p2088_p2 = pnand %p1330_p13, %p307_p11  ;;  %s2093_s4 = sadd.s32 4294967295, %s1931_s22  }
  0x3a   : > { %s1300_s5 = sadd.s32 4294967294, %s1931_s22   ;;  %s38_s26 = ssub.s32 %s1927_s21, %s2475_s24 }
  0x3b   : > { %s41_s3 = sadd.s32 1, %s1911_s17  ;;  %p39_p3 = scmp.eq.s32.totalorder %s38_s26, 0 }
  0x3c   : > { %p48_p4 = scmp.ne.s32.totalorder %s1911_s17, %s1907_s16  ;;  %p54_p5 = scmp.ne.s32.totalorder %s1907_s16, %s1903_s15 }
  0x3d   : > { %p55_p6 = scmp.eq.s32.totalorder %s2093_s4, 0  ;;  %p190_p11 = scmp.eq.s32.totalorder %s2093_s4, 7 }
  0x3e   : > { %s2105_s19 = scalar_select %p39_p3, %s1911_s17, %s41_s3  }
  0x3f   : > { %p2109_p13 = por %p49_p1, %p48_p4  ;;  %p2113_p7 = por %p55_p6, %p54_p5 }
  0x40   : > { %2441 = sst [smem:[#allocation21_spill]] %s2105_s19  ;;  %p2120_p10 = por %p110_p8, %p55_p6 }
  0x41   : > { %p196_p0 = scmp.eq.s32.totalorder %s1300_s5, 7  ;;  %s216_s6 = sand.u32 1, %s1911_s17  }
  0x42   : > { %p2126_p3 = por %p190_p11, %p48_p4  ;;  %s1315_s26 = sshll.u32 %s216_s6, 5 }
  0x43   : > { %p2130_p1 = por %p196_p0, %p54_p5  ;;  %s1410_s3 = sshll.u32 %s1927_s21, 9 }
  0x44   : > { %s2448_s0 = sld [smem:[#allocation23_spill]]  ;;  %s220_s24 = scalar_lea.vmem [#allocation3], %s1315_s26 }
  0x45   : > { %s2446_s28 = scalar_select %p2130_p1, 1, 0 }
  0x46   : > { %s227_s23 = sshll.u32 %s220_s24, 4  ;;  %p2142_p8 = pnand %p1492_p9, %p2109_p13  ;;  %s228_s23 = int_to_ptr.vmem [resolvable:$true] %s227_s23 }
  0x47   : > { %2447 = sst [smem:[#allocation22_spill]] %s2446_s28  ;;  %s2450_s19 = sand.u32 1, %s1899_s14  }
  0x48   : > { %s1324_s17 = sshll.u32 %s2450_s19, 7  ;;  %s217_s29 = scalar_lea.sflag [#allocation4], %s216_s6 }
  0x49   : > { %p1753_p0 = pneg %p2142_p8  ;;  %s1764_s21 = scalar_lea.vmem %s228_s23, 512 }
  0x4a   : > { %s226_s12 = scalar_lea.hbm %s2448_s0, %s1410_s3  ;;  %p1765_p4 = scmp.ne.s32.totalorder %s228_s23, %s1764_s21 }
  0x4b   : > { %s1937_s1 = smov [#allocation3]  }
  0x4c   : > { %p1767_p5 = pnand %p1765_p4, %p1753_p0  ;;  %s1769_s25 = sshll.u32 %s1937_s1, 4  ;;  %s1770_s25 = int_to_ptr.vmem [resolvable:$false] %s1769_s25 }
  0x4d   : > { %s1771_s24 = scalar_lea.vmem %s1770_s25, 1024  ;;  %p1772_p11 = scmp.lt.s32.totalorder %s228_s23, %s1770_s25 }
  0x4e   : > { %p1768_p6 = pneg %p1767_p5  ;;  %p1773_p1 = scmp.lt.s32.totalorder %s1771_s24, %s1764_s21 }
  0x50   : > { %p1774_p9 = por %p1773_p1, %p1772_p11 }
  0x52   : > { %p1775_p13 = pnand %p1774_p9, %p1768_p6 }
  0x54   : > { %1778 = shalt.err (!%p1775_p13)
}
  0x55   : > { %s1938_s20 = smov 64   ;;  %s1939_s19 = smov 4  }
  0x56   : > { %1481 = dma.hbm_to_vmem [thread:$0]  (!%p2142_p8), %s226_s12, 512, %s228_s23, %s217_s29, %s1938_s20, %s1938_s20, %s1939_s19  }
  0x57   : > { %s1412_s6 = sshll.u32 %s2039_s8, 11  ;;  %s277_s1 = scalar_lea.vmem [#allocation8], %s1324_s17 }
  0x58   : > { %s298_s0 = scalar_lea.hbm %s2414_s2, %s1412_s6  ;;  %s299_s14 = sshll.u32 %s277_s1, 4  ;;  %s300_s14 = int_to_ptr.vmem [resolvable:$true] %s299_s14 }
  0x59   : > { %s1792_s25 = scalar_lea.vmem %s300_s14, 2048  ;;  %p2451_p1 = pneg %p2066_p12 }
  0x5a   : > { %p1793_p0 = scmp.ne.s32.totalorder %s300_s14, %s1792_s25  ;;  %s1940_s21 = smov [#allocation8]  }
  0x5b   : > { %s1797_s24 = sshll.u32 %s1940_s21, 4  ;;  %s1798_s24 = int_to_ptr.vmem [resolvable:$false] %s1797_s24 }
  0x5c   : > { %p1795_p4 = pnand %p1793_p0, %p2451_p1  ;;  %s1799_s28 = scalar_lea.vmem %s1798_s24, 4096 }
  0x5d   : > { %p1800_p6 = scmp.lt.s32.totalorder %s300_s14, %s1798_s24  ;;  %p1801_p8 = scmp.lt.s32.totalorder %s1799_s28, %s1792_s25 }
  0x5e   : > { %p1796_p5 = pneg %p1795_p4 }
  0x5f   : > { %p1802_p11 = por %p1801_p8, %p1800_p6 }
  0x61   : > { %p1803_p9 = pnand %p1802_p11, %p1796_p5 }
  0x63   : > { %1806 = shalt.err (!%p1803_p9)
}
  0x64   : > { %1487 = dma.hbm_to_vmem [thread:$0]  (!%p2066_p12), %s298_s0, 2048, %s300_s14, %s2074_s9, %s1938_s20, %s1938_s20, %s1939_s19  }
  0x65   : > { %311 = sbr.rel (%p2088_p2) target bundleno = 659 (0x293), region = 32  ;;  %s2165_s17 = sand.u32 (!%p2088_p2), 1, %s1907_s16  }
  0x66   : > { %s1331_s23 = sshll.u32 (!%p2088_p2), %s2165_s17, 5  ;;  %s314_s8 = scalar_lea.sflag (!%p2088_p2), [#allocation4], %s2165_s17 }
  0x67   : > { %s2169_s29 = scalar_lea.vmem (!%p2088_p2), [#allocation3], %s1331_s23 }
  0x6a   : > { %1878 = dma.done.wait (%p2113_p7), %s314_s8, 512  }
  0x6b   : > { %1880 = vsyncadd (%p2113_p7), %s314_s8, 4294966784  ;;  %s322_s0 = sand.u32 1, %s2093_s4   ;;  %s324_s14 = sand.u32 1, %s1895_s13  }
  0x6c   : > { %s1332_s7 = sshll.u32 %s324_s14, 8  ;;  %s323_s9 = scalar_lea.sflag [#allocation7], %s322_s0 }
  0x6d   : > { %s2177_s30 = scalar_lea.vmem [#allocation6], %s1332_s7 }
  0x6e   : > { %1882 = dma.done.wait (%p2120_p10), %s323_s9, 6144  }
  0x6f   : > { %1884 = vsyncadd (%p2120_p10), %s323_s9, 4294961152  ;;  %s1333_s28 = sshll.u32 %s324_s14, 7  ;;  %s1334_s12 = sshll.u32 %s2165_s17, 6 }
  0x70   : > { %s2184_s5 = scalar_lea.vmem [#allocation8], %s1333_s28  ;;  %s2186_s10 = scalar_lea.vmem [#allocation9], %s1334_s12 }
  0x71   : > { %p1335_p12 = scmp.ne.s32.totalorder %s1915_s18, 0 }
  0x73   : > { %406 = sbr.rel (%p1335_p12) target bundleno = 125 (0x7d), region = 48 }
  0x78   : > { %v1941_v0 = vmov 0.0  }
  0x79   : > { %407 = vst [vmem:[#allocation2 + $0x30] sm:$0xff] %v1941_v0  ;;  %408 = vst [vmem:[#allocation2] sm:$0xff] %v1941_v0 }
  0x7a   : > { %409 = vst [vmem:[#allocation2 + $0x18] sm:$0xff] %v1941_v0  ;;  %410 = vst [vmem:[#allocation2 + $0x10] sm:$0xff] %v1941_v0 }
  0x7b   : > { %411 = vst [vmem:[#allocation2 + $0x8] sm:$0xff] %v1941_v0  ;;  %412 = vst [vmem:[#allocation2 + $0x20] sm:$0xff] %v1941_v0 }
  0x7c   : > { %413 = vst [vmem:[#allocation2 + $0x28] sm:$0xff] %v1941_v0  ;;  %414 = vst [vmem:[#allocation2 + $0x38] sm:$0xff] %v1941_v0 }
  0x7d PF: > { %v1591_v1 = vld [vmem:[%s2177_s30 + $0xe4] ss:$16 sps:$4 sm:$0xff]   ;;  %v1593_v2 = vld [vmem:[%s2177_s30 + $0xe0] ss:$16 sps:$4 sm:$0xff]   ;;  %v1942_v3 = vmov 0   ;;  %v1625_v34 = vld [vmem:[%s2169_s29 + $0x8] sm:$0xff]  }
  0x7e   : > { %671 = vmatprep.mubr.bf16.mxu0 %v1942_v3  ;;  %744 = vmatprep.mubr.bf16.mxu1 %v1942_v3  ;;  %v1594_v4 = vld [vmem:[%s2177_s30 + $0xc4] ss:$16 sps:$4 sm:$0xff]   ;;  %v1596_v5 = vld [vmem:[%s2177_s30 + $0xc0] ss:$16 sps:$4 sm:$0xff]   ;;  %v1614_v10 = vld [vmem:[%s2177_s30 + $0xec] ss:$16 sps:$4 sm:$0xff]  }
  0x7f   : > { %639 = vmatprep.subr.bf16.mxu0 %v1591_v1  ;;  %v1597_v6 = vld [vmem:[%s2177_s30 + $0xa4] ss:$16 sps:$4 sm:$0xff]   ;;  %v1599_v7 = vld [vmem:[%s2177_s30 + $0xa0] ss:$16 sps:$4 sm:$0xff]   ;;  %v1617_v11 = vld [vmem:[%s2177_s30 + $0xe8] ss:$16 sps:$4 sm:$0xff]   ;;  %712 = vmatprep.subr.bf16.mxu1 %v1614_v10 }
  0x80   : > { %640 = vmatpush1.bf16.msra.mxu0 %v1593_v2  ;;  %v1600_v8 = vld [vmem:[%s2177_s30 + $0x84] ss:$16 sps:$4 sm:$0xff]   ;;  %v1602_v9 = vld [vmem:[%s2177_s30 + $0x80] ss:$16 sps:$4 sm:$0xff]   ;;  %v1619_v13 = vld [vmem:[%s2177_s30 + $0xcc] ss:$16 sps:$4 sm:$0xff]   ;;  %713 = vmatpush1.bf16.msra.mxu1 %v1617_v11 }
  0x81   : > { %641 = vmatprep.subr.bf16.mxu0 %v1594_v4  ;;  %v1603_v12 = vld [vmem:[%s2177_s30 + $0x64] ss:$16 sps:$4 sm:$0xff]   ;;  %v1621_v14 = vld [vmem:[%s2177_s30 + $0xc8] ss:$16 sps:$4 sm:$0xff]   ;;  %v1605_v15 = vld [vmem:[%s2177_s30 + $0x60] ss:$16 sps:$4 sm:$0xff]   ;;  %714 = vmatprep.subr.bf16.mxu1 %v1619_v13 }
  0x82   : > { %v1622_v16 = vld [vmem:[%s2177_s30 + $0xac] ss:$16 sps:$4 sm:$0xff]   ;;  %v1606_v17 = vld [vmem:[%s2177_s30 + $0x44] ss:$16 sps:$4 sm:$0xff]   ;;  %v1608_v18 = vld [vmem:[%s2177_s30 + $0x40] ss:$16 sps:$4 sm:$0xff]  }
  0x83   : > { %v1624_v19 = vld [vmem:[%s2177_s30 + $0xa8] ss:$16 sps:$4 sm:$0xff]   ;;  %v1626_v20 = vld [vmem:[%s2177_s30 + $0x8c] ss:$16 sps:$4 sm:$0xff]   ;;  %v1609_v21 = vld [vmem:[%s2177_s30 + $0x24] ss:$16 sps:$4 sm:$0xff]  }
  0x84   : > { %642 = vmatpush1.bf16.msra.mxu0 %v1596_v5  ;;  %715 = vmatpush1.bf16.msra.mxu1 %v1621_v14  ;;  %v1611_v22 = vld [vmem:[%s2177_s30 + $0x20] ss:$16 sps:$4 sm:$0xff]   ;;  %v1612_v23 = vld [vmem:[%s2177_s30 + $0x4] ss:$16 sps:$4 sm:$0xff]   ;;  %v1628_v24 = vld [vmem:[%s2177_s30 + $0x88] ss:$16 sps:$4 sm:$0xff]  }
  0x85   : > { %643 = vmatprep.subr.bf16.mxu0 %v1597_v6  ;;  %716 = vmatprep.subr.bf16.mxu1 %v1622_v16  ;;  %v1629_v25 = vld [vmem:[%s2177_s30 + $0x6c] ss:$16 sps:$4 sm:$0xff]   ;;  %v1631_v26 = vld [vmem:[%s2177_s30 + $0x68] ss:$16 sps:$4 sm:$0xff]   ;;  %v1616_v27 = vld [vmem:[%s2177_s30] ss:$16 sps:$4 sm:$0xff]  }
  0x86   : > { %v1633_v28 = vld [vmem:[%s2177_s30 + $0x4c] ss:$16 sps:$4 sm:$0xff]   ;;  %v1618_v29 = vld [vmem:[%s2169_s29] sm:$0xff]   ;;  %v1635_v30 = vld [vmem:[%s2177_s30 + $0x48] ss:$16 sps:$4 sm:$0xff]   ;;  %p1404_p2 = scmp.ne.s32.totalorder %s1915_s18, 3 }
  0x87   : > { %v1636_v31 = vld [vmem:[%s2177_s30 + $0x2c] ss:$16 sps:$4 sm:$0xff]   ;;  %v1638_v32 = vld [vmem:[%s2177_s30 + $0x28] ss:$16 sps:$4 sm:$0xff]   ;;  %v1632_v36 = vld [vmem:[%s2169_s29 + $0x10] sm:$0xff]  }
  0x88   : > { %644 = vmatpush1.bf16.msra.mxu0 %v1599_v7  ;;  %717 = vmatpush1.bf16.msra.mxu1 %v1624_v19  ;;  %v1640_v33 = vld [vmem:[%s2177_s30 + $0xc] ss:$16 sps:$4 sm:$0xff]   ;;  %v1642_v35 = vld [vmem:[%s2177_s30 + $0x8] ss:$16 sps:$4 sm:$0xff]   ;;  %v1645_v40 = vld [vmem:[%s2184_s5 + $0x70] sm:$0xff]  }
  0x89   : > { %645 = vmatprep.subr.bf16.mxu0 %v1600_v8  ;;  %718 = vmatprep.subr.bf16.mxu1 %v1626_v20  ;;  %v1639_v37 = vld [vmem:[%s2169_s29 + $0x18] sm:$0xff]   ;;  %v1646_v41 = vld [vmem:[%s2184_s5 + $0x30] sm:$0xff]   ;;  %v1647_v42 = vld [vmem:[%s2184_s5 + $0x68] sm:$0xff]  }
  0x8a   : > { %v1643_v38 = vld [vmem:[%s2184_s5 + $0x78] sm:$0xff]   ;;  %v1648_v43 = vld [vmem:[%s2184_s5 + $0x28] sm:$0xff]   ;;  %v1649_v44 = vld [vmem:[%s2184_s5 + $0x60] sm:$0xff]  }
  0x8b   : > { %v1644_v39 = vld [vmem:[%s2184_s5 + $0x38] sm:$0xff]   ;;  %v1650_v45 = vld [vmem:[%s2184_s5 + $0x20] sm:$0xff]   ;;  %v1653_v48 = vld [vmem:[%s2184_s5 + $0x50] sm:$0xff]  }
  0x8c   : > { %646 = vmatpush1.bf16.msra.mxu0 %v1602_v9  ;;  %719 = vmatpush1.bf16.msra.mxu1 %v1628_v24  ;;  %v1651_v46 = vld [vmem:[%s2184_s5 + $0x58] sm:$0xff]   ;;  %v1654_v49 = vld [vmem:[%s2184_s5 + $0x10] sm:$0xff]   ;;  %v1655_v50 = vld [vmem:[%s2184_s5 + $0x48] sm:$0xff]  }
  0x8d   : > { %647 = vmatprep.subr.bf16.mxu0 %v1603_v12  ;;  %720 = vmatprep.subr.bf16.mxu1 %v1629_v25  ;;  %v1652_v47 = vld [vmem:[%s2184_s5 + $0x18] sm:$0xff]   ;;  %v1656_v51 = vld [vmem:[%s2184_s5 + $0x8] sm:$0xff]   ;;  %v1657_v52 = vld [vmem:[%s2184_s5 + $0x40] sm:$0xff]  }
  0x8e   : > { %v1658_v53 = vld [vmem:[%s2184_s5] sm:$0xff]  }
  0x90   : > { %648 = vmatpush1.bf16.msra.mxu0 %v1605_v15  ;;  %721 = vmatpush1.bf16.msra.mxu1 %v1631_v26 }
  0x91   : > { %649 = vmatprep.subr.bf16.mxu0 %v1606_v17  ;;  %722 = vmatprep.subr.bf16.mxu1 %v1633_v28 }
  0x94   : > { %650 = vmatpush1.bf16.msra.mxu0 %v1608_v18  ;;  %723 = vmatpush1.bf16.msra.mxu1 %v1635_v30 }
  0x95   : > { %651 = vmatprep.subr.bf16.mxu0 %v1609_v21  ;;  %724 = vmatprep.subr.bf16.mxu1 %v1636_v31 }
  0x98   : > { %652 = vmatpush1.bf16.msra.mxu0 %v1611_v22  ;;  %725 = vmatpush1.bf16.msra.mxu1 %v1638_v32 }
  0x99   : > { %653 = vmatprep.subr.bf16.mxu0 %v1612_v23  ;;  %726 = vmatprep.subr.bf16.mxu1 %v1640_v33 }
  0x9c   : > { %654 = vmatpush1.bf16.msra.mxu0 %v1616_v27  ;;  %727 = vmatpush1.bf16.msra.mxu1 %v1642_v35 }
  0x9d   : > { %1414 = vmatprep.subr.bf16.mxu0 %v1643_v38  ;;  %1454 = vmatprep.subr.bf16.mxu1 %v1643_v38 }
  0x9f   : > { %672 = vmatmul.mubr.bf16.vlgmr.msra.gmra.mxu0 %v1618_v29  ;;  %745 = vmatmul.mubr.bf16.vlgmr.msra.gmra.mxu1 %v1618_v29 }
  0xa0   : > { %681 = vmatprep.mubr.bf16.mxu0 %v1942_v3  ;;  %754 = vmatprep.mubr.bf16.mxu1 %v1942_v3 }
  0xa1   : > { %1415 = vmatpush3.bf16.msra.mxu0 %v1644_v39  ;;  %1462 = vmatpush3.bf16.msra.mxu1 %v1644_v39 }
  0xa2   : > { %1416 = vmatprep.subr.bf16.mxu0 %v1645_v40  ;;  %1455 = vmatprep.subr.bf16.mxu1 %v1645_v40 }
  0xa5   : > { %1417 = vmatpush3.bf16.msra.mxu0 %v1646_v41  ;;  %1463 = vmatpush3.bf16.msra.mxu1 %v1646_v41 }
  0xa6   : > { %1418 = vmatprep.subr.bf16.mxu0 %v1647_v42  ;;  %1456 = vmatprep.subr.bf16.mxu1 %v1647_v42 }
  0xa7   : > { %682 = vmatmul.mubr.bf16.gmra.mxu0 %v1625_v34  ;;  %755 = vmatmul.mubr.bf16.gmra.mxu1 %v1625_v34 }
  0xa8   : > { %691 = vmatprep.mubr.bf16.mxu0 %v1942_v3  ;;  %764 = vmatprep.mubr.bf16.mxu1 %v1942_v3 }
  0xa9   : > { %1419 = vmatpush3.bf16.msra.mxu0 %v1648_v43  ;;  %1464 = vmatpush3.bf16.msra.mxu1 %v1648_v43 }
  0xaa   : > { %1420 = vmatprep.subr.bf16.mxu0 %v1649_v44  ;;  %1457 = vmatprep.subr.bf16.mxu1 %v1649_v44 }
  0xad   : > { %1421 = vmatpush3.bf16.msra.mxu0 %v1650_v45  ;;  %1465 = vmatpush3.bf16.msra.mxu1 %v1650_v45 }
  0xae   : > { %1422 = vmatprep.subr.bf16.mxu0 %v1651_v46  ;;  %1458 = vmatprep.subr.bf16.mxu1 %v1651_v46 }
  0xaf   : > { %692 = vmatmul.mubr.bf16.gmra.mxu0 %v1632_v36  ;;  %765 = vmatmul.mubr.bf16.gmra.mxu1 %v1632_v36 }
  0xb0   : > { %701 = vmatprep.mubr.bf16.mxu0 %v1942_v3  ;;  %774 = vmatprep.mubr.bf16.mxu1 %v1942_v3 }
  0xb1   : > { %1423 = vmatpush3.bf16.msra.mxu0 %v1652_v47  ;;  %1466 = vmatpush3.bf16.msra.mxu1 %v1652_v47 }
  0xb2   : > { %1424 = vmatprep.subr.bf16.mxu0 %v1653_v48  ;;  %1459 = vmatprep.subr.bf16.mxu1 %v1653_v48 }
  0xb5   : > { %1425 = vmatpush3.bf16.msra.mxu0 %v1654_v49  ;;  %1467 = vmatpush3.bf16.msra.mxu1 %v1654_v49 }
  0xb6   : > { %1426 = vmatprep.subr.bf16.mxu0 %v1655_v50  ;;  %1460 = vmatprep.subr.bf16.mxu1 %v1655_v50 }
  0xb7   : > { %702 = vmatmul.mubr.bf16.gmra.mxu0 %v1639_v37  ;;  %775 = vmatmul.mubr.bf16.gmra.mxu1 %v1639_v37 }
  0xb9   : > { %1427 = vmatpush3.bf16.msra.mxu0 %v1656_v51  ;;  %1468 = vmatpush3.bf16.msra.mxu1 %v1656_v51 }
  0xba   : > { %1428 = vmatprep.subr.bf16.mxu0 %v1657_v52  ;;  %1461 = vmatprep.subr.bf16.mxu1 %v1657_v52 }
  0xbd   : > { %1429 = vmatpush3.bf16.msra.mxu0 %v1658_v53  ;;  %1469 = vmatpush3.bf16.msra.mxu1 %v1658_v53 }
 0x15f   : > { %v2249_v54 = vpop.f32.mrf.mxu0  ;;  %v2267_v2 = vpop.f32.mrf.mxu1 }
 0x160   : > { %v1372_v55 = vmul.f32 -1.442695, %v2249_v54 }
 0x161   : > { %v2252_v56 = vpop.f32.mrf.mxu0  ;;  %v2272_v5 = vpop.f32.mrf.mxu1 }
 0x162   : > { %1659 = vpow2.f32 %v1372_v55  ;;  %v1373_v57 = vmul.f32 -1.442695, %v2252_v56 }
 0x163   : > { %v2255_v58 = vpop.f32.mrf.mxu0  ;;  %v2277_v8 = vpop.f32.mrf.mxu1 }
 0x164   : > { %1661 = vpow2.f32 %v1373_v57  ;;  %v1374_v59 = vmul.f32 -1.442695, %v2255_v58 }
 0x165   : > { %v2258_v60 = vpop.f32.mrf.mxu0  ;;  %v2282_v13 = vpop.f32.mrf.mxu1 }
 0x166   : > { %1663 = vpow2.f32 %v1374_v59  ;;  %v1375_v61 = vmul.f32 -1.442695, %v2258_v60 }
 0x167   : > { %v2261_v62 = vpop.f32.mrf.mxu0  ;;  %v2290_v22 = vpop.f32.mrf.mxu1 }
 0x168   : > { %1665 = vpow2.f32 %v1375_v61  ;;  %v1376_v63 = vmul.f32 -1.442695, %v2261_v62 }
 0x169   : > { %v2264_v0 = vpop.f32.mrf.mxu0  ;;  %v2298_v31 = vpop.f32.mrf.mxu1 }
 0x16a   : > { %1667 = vpow2.f32 %v1376_v63  ;;  %v1377_v1 = vmul.f32 -1.442695, %v2264_v0 }
 0x16b   : > { %v2269_v3 = vpop.f32.mrf.mxu0  ;;  %v760_v40 = vpop.f32.mrf.mxu1 }
 0x16c   : > { %1669 = vpow2.f32 %v1377_v1  ;;  %v1378_v4 = vmul.f32 -1.442695, %v2269_v3 }
 0x16d   : > { %v2274_v6 = vpop.f32.mrf.mxu0  ;;  %v762_v47 = vpop.f32.mrf.mxu1 }
 0x16e   : > { %1671 = vpow2.f32 %v1378_v4  ;;  %v1379_v7 = vmul.f32 -1.442695, %v2274_v6 }
 0x16f   : > { %v1660_v9 = vpop.eup %1659  ;;  %v2279_v10 = vpop.f32.mrf.mxu0 }
 0x170   : > { %v833_v11 = vadd.f32 1.0, %v1660_v9  ;;  %1673 = vpow2.f32 %v1379_v7  ;;  %v1380_v12 = vmul.f32 -1.442695, %v2279_v10  ;;  %v2311_v59 = vpop.f32.mrf.mxu1 }
 0x171   : > { %v1662_v14 = vpop.eup %1661  ;;  %v2284_v15 = vpop.f32.mrf.mxu0 }
 0x172   : > { %1675 = vrcp.f32 %v833_v11  ;;  %v834_v16 = vadd.f32 1.0, %v1662_v14  ;;  %v1381_v17 = vmul.f32 -1.442695, %v2284_v15 }
 0x173   : > { %v1664_v18 = vpop.eup %1663  ;;  %1677 = vpow2.f32 %v1380_v12  ;;  %v2287_v19 = vpop.f32.mrf.mxu0 }
 0x174   : > { %1679 = vrcp.f32 %v834_v16  ;;  %v835_v20 = vadd.f32 1.0, %v1664_v18  ;;  %v1382_v21 = vmul.f32 -1.442695, %v2287_v19  ;;  %v768_v16 = vpop.f32.mrf.mxu1 }
 0x175   : > { %v1666_v23 = vpop.eup %1665  ;;  %1681 = vpow2.f32 %v1381_v17  ;;  %v2292_v24 = vpop.f32.mrf.mxu0 }
 0x176   : > { %1683 = vrcp.f32 %v835_v20  ;;  %v836_v25 = vadd.f32 1.0, %v1666_v23  ;;  %v1383_v26 = vmul.f32 -1.442695, %v2292_v24 }
 0x177   : > { %v1668_v27 = vpop.eup %1667  ;;  %1685 = vpow2.f32 %v1382_v21  ;;  %v2295_v28 = vpop.f32.mrf.mxu0 }
 0x178   : > { %1687 = vrcp.f32 %v836_v25  ;;  %v837_v29 = vadd.f32 1.0, %v1668_v27  ;;  %v1384_v30 = vmul.f32 -1.442695, %v2295_v28 }
 0x179   : > { %v1670_v32 = vpop.eup %1669  ;;  %1689 = vpow2.f32 %v1383_v26  ;;  %v2300_v33 = vpop.f32.mrf.mxu0 }
 0x17a   : > { %1691 = vrcp.f32 %v837_v29  ;;  %v838_v34 = vadd.f32 1.0, %v1670_v32  ;;  %v1385_v35 = vmul.f32 -1.442695, %v2300_v33 }
 0x17b   : > { %v1672_v36 = vpop.eup %1671  ;;  %1693 = vpow2.f32 %v1384_v30  ;;  %v2303_v37 = vpop.f32.mrf.mxu0 }
 0x17c   : > { %1695 = vrcp.f32 %v838_v34  ;;  %v839_v38 = vadd.f32 1.0, %v1672_v36  ;;  %v1386_v39 = vmul.f32 -1.442695, %v2303_v37 }
 0x17d   : > { %v1674_v41 = vpop.eup %1673  ;;  %1697 = vpow2.f32 %v1385_v35  ;;  %v2306_v42 = vpop.f32.mrf.mxu0 }
 0x17e   : > { %1699 = vrcp.f32 %v839_v38  ;;  %v840_v43 = vadd.f32 1.0, %v1674_v41  ;;  %v1387_v44 = vmul.f32 -1.442695, %v2306_v42 }
 0x17f   : > { %v1676_v45 = vpop.eup %1675  ;;  %1701 = vpow2.f32 %v1386_v39 }
 0x180   : > { %v1678_v46 = vpop.eup %1677  ;;  %1703 = vrcp.f32 %v840_v43  ;;  %v881_v63 = vmul.f32 %v1676_v45, %v2249_v54 }
 0x181   : > { %v1680_v48 = vpop.eup %1679  ;;  %1705 = vpow2.f32 %v1387_v44  ;;  %v841_v50 = vadd.f32 1.0, %v1678_v46 }
 0x182   : > { %v1682_v49 = vpop.eup %1681  ;;  %v882_v55 = vmul.f32 %v1680_v48, %v2252_v56  ;;  %v897_v54 = vmul.f32 %v881_v63, %v2267_v2 }
 0x183   : > { %v1684_v51 = vpop.eup %1683  ;;  %v842_v52 = vadd.f32 1.0, %v1682_v49 }
 0x184   : > { %v1686_v53 = vpop.eup %1685  ;;  %v883_v57 = vmul.f32 %v1684_v51, %v2255_v58  ;;  %v898_v56 = vmul.f32 %v882_v55, %v2272_v5  ;;  %v770_v5 = vpop.f32.mrf.mxu1 }
 0x185   : > { %v1688_v61 = vpop.eup %1687  ;;  %1707 = vrcp.f32 %v842_v52  ;;  %v843_v1 = vadd.f32 1.0, %v1686_v53 }
 0x186   : > { %v1690_v4 = vpop.eup %1689  ;;  %v884_v7 = vmul.f32 %v1688_v61, %v2258_v60  ;;  %1709 = vrcp.f32 %v841_v50  ;;  %v899_v12 = vmul.f32 %v883_v57, %v2277_v8  ;;  %v772_v38 = vpop.f32.mrf.mxu1 }
 0x187   : > { %v1692_v9 = vpop.eup %1691  ;;  %1711 = vrcp.f32 %v843_v1  ;;  %v844_v11 = vadd.f32 1.0, %v1690_v4 }
 0x188   : > { %v1694_v14 = vpop.eup %1693  ;;  %v900_v58 = vmul.f32 %v884_v7, %v2282_v13  ;;  %v921_v25 = vpack.c.bf16 %v899_v12, %v897_v54  ;;  %v885_v13 = vmul.f32 %v1692_v9, %v2261_v62  ;;  %v776_v45 = vpop.f32.mrf.mxu1  ;;  %v914_v54 = vld [vmem:[#allocation2] sm:$0xff] }
 0x189   : > { %v1696_v17 = vpop.eup %1695  ;;  %1713 = vrcp.f32 %v844_v11  ;;  %v845_v20 = vadd.f32 1.0, %v1694_v14 }
 0x18a   : > { %v1698_v18 = vpop.eup %1697  ;;  %v922_v21 = vpack.c.bf16 %v900_v58, %v898_v56  ;;  %v886_v27 = vmul.f32 %v1696_v17, %v2264_v0  ;;  %v778_v49 = vpop.f32.mrf.mxu1 }
 0x18b   : > { %v1700_v60 = vpop.eup %1699  ;;  %v846_v23 = vadd.f32 1.0, %v1698_v18 }
 0x18c   : > { %v1702_v26 = vpop.eup %1701  ;;  %v887_v8 = vmul.f32 %v1700_v60, %v2269_v3  ;;  %1089 = vmatprep.mubr.bf16.mxu0 %v922_v21  ;;  %v902_v36 = vmul.f32 %v886_v27, %v2298_v31  ;;  %v901_v3 = vmul.f32 %v885_v13, %v2290_v22  ;;  %v915_v21 = vld [vmem:[#allocation2 + $0x18] sm:$0xff]  ;;  %v916_v27 = vld [vmem:[#allocation2 + $0x10] sm:$0xff] }
 0x18d   : > { %v1704_v29 = vpop.eup %1703  ;;  %1715 = vrcp.f32 %v846_v23  ;;  %v847_v30 = vadd.f32 1.0, %v1702_v26  ;;  %1090 = vmatmul.mubr.bf16.vlgmr.msra.gmra.mxu0 %v921_v25 }
 0x18e   : > { %v1706_v2 = vpop.eup %1705  ;;  %v888_v32 = vmul.f32 %v1704_v29, %v2274_v6  ;;  %1717 = vrcp.f32 %v845_v20  ;;  %v903_v35 = vmul.f32 %v887_v8, %v760_v40 }
 0x18f   : > { %1719 = vrcp.f32 %v847_v30  ;;  %v848_v34 = vadd.f32 1.0, %v1706_v2  ;;  %v917_v30 = vld [vmem:[#allocation2 + $0x8] sm:$0xff] }
 0x190   : > { %v904_v0 = vmul.f32 %v888_v32, %v762_v47  ;;  %v923_v43 = vpack.c.bf16 %v903_v35, %v901_v3 }
 0x191   : > { %1721 = vrcp.f32 %v848_v34 }
 0x192   : > { %v1708_v39 = vpop.eup %1707  ;;  %v924_v41 = vpack.c.bf16 %v904_v0, %v902_v36  ;;  %v918_v36 = vld [vmem:[#allocation2 + $0x20] sm:$0xff] }
 0x193   : > { %v1710_v62 = vpop.eup %1709  ;;  %v890_v6 = vmul.f32 %v1708_v39, %v2284_v15  ;;  %v780_v15 = vpop.f32.mrf.mxu1 }
 0x194   : > { %v1712_v44 = vpop.eup %1711  ;;  %1097 = vmatprep.mubr.bf16.mxu0 %v924_v41  ;;  %v889_v31 = vmul.f32 %v1710_v62, %v2279_v10  ;;  %v919_v41 = vld [vmem:[#allocation2 + $0x28] sm:$0xff] }
 0x195   : > { %v891_v46 = vmul.f32 %v1712_v44, %v2287_v19  ;;  %1098 = vmatmul.mubr.bf16.gmra.mxu0 %v923_v43  ;;  %v906_v22 = vmul.f32 %v890_v6, %v768_v16  ;;  %v782_v7 = vpop.f32.mrf.mxu1  ;;  %v920_v6 = vld [vmem:[#allocation2 + $0x38] sm:$0xff] }
 0x196   : > { %v1714_v40 = vpop.eup %1713  ;;  %v905_v52 = vmul.f32 %v889_v31, %v2311_v59 }
 0x197   : > { %v892_v47 = vmul.f32 %v1714_v40, %v2292_v24  ;;  %v907_v48 = vmul.f32 %v891_v46, %v770_v5 }
 0x199   : > { %v908_v50 = vmul.f32 %v892_v47, %v772_v38  ;;  %v925_v61 = vpack.c.bf16 %v907_v48, %v905_v52 }
 0x19a   : > { %v1716_v51 = vpop.eup %1715 }
 0x19b   : > { %v1718_v53 = vpop.eup %1717  ;;  %v926_v55 = vpack.c.bf16 %v908_v50, %v906_v22  ;;  %v894_v19 = vmul.f32 %v1716_v51, %v2300_v33  ;;  %v913_v33 = vld [vmem:[#allocation2 + $0x30] sm:$0xff] }
 0x19c   : > { %v1720_v57 = vpop.eup %1719  ;;  %v893_v24 = vmul.f32 %v1718_v53, %v2295_v28 }
 0x19d   : > { %v895_v63 = vmul.f32 %v1720_v57, %v2303_v37  ;;  %1105 = vmatprep.mubr.bf16.mxu1 %v926_v55  ;;  %v910_v9 = vmul.f32 %v894_v19, %v778_v49 }
 0x19e   : > { %v1722_v10 = vpop.eup %1721  ;;  %1106 = vmatmul.mubr.bf16.vlgmr.msra.gmra.mxu1 %v925_v61  ;;  %v909_v11 = vmul.f32 %v893_v24, %v776_v45 }
 0x19f   : > { %v896_v1 = vmul.f32 %v1722_v10, %v2306_v42  ;;  %v911_v4 = vmul.f32 %v895_v63, %v780_v15 }
 0x1a1   : > { %v912_v59 = vmul.f32 %v896_v1, %v782_v7  ;;  %v927_v14 = vpack.c.bf16 %v911_v4, %v909_v11 }
 0x1a3   : > { %v928_v12 = vpack.c.bf16 %v912_v59, %v910_v9 }
 0x1a5   : > { %1113 = vmatprep.mubr.bf16.mxu1 %v928_v12 }
 0x1a6   : > { %1114 = vmatmul.mubr.bf16.gmra.mxu1 %v927_v14 }
 0x24d   : > { %v1430_v56 = vpop.f32.mrf.mxu0 }
 0x24f   : > { %v1431_v58 = vpop.f32.mrf.mxu0 }
 0x250   : > { %v1432_v37 = vadd.f32 %v1431_v58, %v1430_v56 }
 0x251   : > { %v1433_v16 = vpop.f32.mrf.mxu0 }
 0x252   : > { %v1122_v17 = vadd.f32 %v1432_v37, %v913_v33 }
 0x253   : > { %v1434_v28 = vpop.f32.mrf.mxu0 }
 0x254   : > { %1130 = vst [vmem:[#allocation2 + $0x30] sm:$0xff] %v1122_v17  ;;  %v1435_v18 = vadd.f32 %v1434_v28, %v1433_v16 }
 0x255   : > { %v1436_v42 = vpop.f32.mrf.mxu0 }
 0x256   : > { %v1123_v20 = vadd.f32 %v1435_v18, %v914_v54 }
 0x257   : > { %v1437_v60 = vpop.f32.mrf.mxu0 }
 0x258   : > { %1131 = vst [vmem:[#allocation2] sm:$0xff] %v1123_v20  ;;  %v1438_v23 = vadd.f32 %v1437_v60, %v1436_v42 }
 0x259   : > { %v1439_v25 = vpop.f32.mrf.mxu0 }
 0x25a   : > { %v1124_v26 = vadd.f32 %v1438_v23, %v915_v21 }
 0x25b   : > { %v1440_v8 = vpop.f32.mrf.mxu0 }
 0x25c   : > { %1132 = vst [vmem:[#allocation2 + $0x18] sm:$0xff] %v1124_v26  ;;  %v1441_v5 = vadd.f32 %v1440_v8, %v1439_v25 }
 0x25e   : > { %v1125_v29 = vadd.f32 %v1441_v5, %v916_v27  ;;  %v1442_v13 = vpop.f32.mrf.mxu1 }
 0x260   : > { %1133 = vst [vmem:[#allocation2 + $0x10] sm:$0xff] %v1125_v29  ;;  %v1443_v2 = vpop.f32.mrf.mxu1 }
 0x261   : > { %v1444_v32 = vadd.f32 %v1443_v2, %v1442_v13 }
 0x262   : > { %v1445_v34 = vpop.f32.mrf.mxu1 }
 0x263   : > { %v1126_v35 = vadd.f32 %v1444_v32, %v917_v30 }
 0x264   : > { %v1446_v0 = vpop.f32.mrf.mxu1 }
 0x265   : > { %1134 = vst [vmem:[#allocation2 + $0x8] sm:$0xff] %v1126_v35  ;;  %v1447_v38 = vadd.f32 %v1446_v0, %v1445_v34 }
 0x266   : > { %v1448_v3 = vpop.f32.mrf.mxu1 }
 0x267   : > { %v1127_v39 = vadd.f32 %v1447_v38, %v918_v36 }
 0x268   : > { %v1449_v62 = vpop.f32.mrf.mxu1 }
 0x269   : > { %1135 = vst [vmem:[#allocation2 + $0x20] sm:$0xff] %v1127_v39  ;;  %v1450_v43 = vadd.f32 %v1449_v62, %v1448_v3 }
 0x26a   : > { %v1451_v44 = vpop.f32.mrf.mxu1 }
 0x26b   : > { %v1128_v45 = vadd.f32 %v1450_v43, %v919_v41 }
 0x26c   : > { %v1452_v46 = vpop.f32.mrf.mxu1 }
 0x26d   : > { %1136 = vst [vmem:[#allocation2 + $0x28] sm:$0xff] %v1128_v45  ;;  %v1453_v40 = vadd.f32 %v1452_v46, %v1451_v44  ;;  %1141 = sbr.rel (%p1404_p2) target bundleno = 634 (0x27a), region = 52 }
 0x26f   : > { %v1129_v31 = vadd.f32 %v1453_v40, %v920_v6 }
 0x271   : > { %1137 = vst [vmem:[#allocation2 + $0x38] sm:$0xff] %v1129_v31 }
 0x272   : > { %v1142_v47 = vld [vmem:[#allocation2 + $0x30] sm:$0xff]  ;;  %v1143_v48 = vld [vmem:[#allocation2] sm:$0xff]  ;;  %v1144_v49 = vld [vmem:[#allocation2 + $0x18] sm:$0xff] }
 0x273   : > { %1150 = vst [vmem:[%s2186_s10] sm:$0xff] %v1142_v47  ;;  %1151 = vst [vmem:[%s2186_s10 + $0x8] sm:$0xff] %v1143_v48  ;;  %v1145_v22 = vld [vmem:[#allocation2 + $0x10] sm:$0xff]  ;;  %v1146_v50 = vld [vmem:[#allocation2 + $0x8] sm:$0xff] }
 0x274   : > { %1152 = vst [vmem:[%s2186_s10 + $0x10] sm:$0xff] %v1144_v49  ;;  %v1147_v51 = vld [vmem:[#allocation2 + $0x20] sm:$0xff]  ;;  %1153 = vst [vmem:[%s2186_s10 + $0x18] sm:$0xff] %v1145_v22  ;;  %v1148_v52 = vld [vmem:[#allocation2 + $0x28] sm:$0xff] }
 0x275   : > { %1154 = vst [vmem:[%s2186_s10 + $0x20] sm:$0xff] %v1146_v50  ;;  %1155 = vst [vmem:[%s2186_s10 + $0x28] sm:$0xff] %v1147_v51 }
 0x276   : > { %1156 = vst [vmem:[%s2186_s10 + $0x30] sm:$0xff] %v1148_v52 }
 0x278   : > { %v1149_v53 = vld [vmem:[#allocation2 + $0x38] sm:$0xff] }
 0x279   : > { %1157 = vst [vmem:[%s2186_s10 + $0x38] sm:$0xff] %v1149_v53 }
 0x27a PF: > { %s2452_s18 = sld [smem:[#allocation15_spill]]  ;;  %s1172_s3 = sshll.u32 %s2186_s10, 4  ;;  %s2350_s3 = int_to_ptr.vmem [resolvable:$true] %s1172_s3 }
 0x27b   : > { %s2453_s19 = sld [smem:[#allocation25_spill]]  ;;  %s1159_s1 = scalar_lea.sflag [#allocation5], %s2165_s17 }
 0x27c   : > { %s1807_s25 = scalar_lea.vmem %s2350_s3, 1024  ;;  %s1943_s21 = smov [#allocation9]  }
 0x27d   : > { %p1808_p7 = scmp.ne.s32.totalorder %s2350_s3, %s1807_s25  ;;  %s1811_s24 = sshll.u32 %s1943_s21, 4  ;;  %s1812_s24 = int_to_ptr.vmem [resolvable:$false] %s1811_s24 }
 0x27e   : > { %s1813_s23 = scalar_lea.vmem %s1812_s24, 2048  ;;  %p1814_p0 = scmp.lt.s32.totalorder %s2350_s3, %s1812_s24 }
 0x27f   : > { %p1809_p10 = pnand %p1808_p7, %p2126_p3  ;;  %p1815_p1 = scmp.lt.s32.totalorder %s1813_s23, %s1807_s25 }
 0x280   : > { %s1413_s4 = sshll.u32 %s2452_s18, 10 }
 0x281   : > { %s2454_s6 = smov %s2453_s19  ;;  %s2347_s26 = scalar_lea.hbm %s2453_s19, %s1413_s4 }
 0x282   : > { %p1810_p13 = pneg %p1809_p10  ;;  %p1816_p4 = por %p1815_p1, %p1814_p0 }
 0x284   : > { %p1817_p5 = pnand %p1816_p4, %p1810_p13 }
 0x286   : > { %1820 = shalt.err (!%p1817_p5)
}
 0x287   : > { %s1821_s8 = scalar_lea.hbm %s2347_s26, 1024  ;;  %s1825_s14 = scalar_lea.hbm %s2454_s6, 2048 }
 0x288   : > { %p1822_p6 = scmp.ne.s32.totalorder %s2347_s26, %s1821_s8  ;;  %p1826_p9 = scmp.lt.s32.totalorder %s2347_s26, %s2454_s6 }
 0x289   : > { %p1827_p12 = scmp.lt.s32.totalorder %s1825_s14, %s1821_s8 }
 0x28a   : > { %p1823_p8 = pnand %p1822_p6, %p2126_p3 }
 0x28b   : > { %p1828_p2 = por %p1827_p12, %p1826_p9 }
 0x28c   : > { %p1824_p11 = pneg %p1823_p8 }
 0x28e   : > { %p1829_p7 = pnand %p1828_p2, %p1824_p11 }
 0x290   : > { %1832 = shalt.err (!%p1829_p7)
}
 0x291   : > { %s1944_s30 = smov 128   ;;  %s1945_s28 = smov 8  }
 0x292   : > { %1476 = dma.vmem_to_hbm [thread:$0]  (%p2126_p3), %s2350_s3, 1024, %s2347_s26, %s1159_s1, %s1944_s30, %s1944_s30, %s1945_s28  }
 0x293 PF: > { %s2455_s12 = sld [smem:[#allocation22_spill]]  ;;  %p1493_p10 = scmp.ge.s32.totalorder %s1931_s22, 2 }
 0x294   : > { %s1187_s5 = sand.u32 1, %s1903_s15  }
 0x295   : > { %s1188_s10 = scalar_lea.sflag [#allocation5], %s1187_s5 }
 0x299   : > { %p2456_p13 = scmp.ne.s32.totalorder %s2455_s12, 0 }
 0x29b   : > { %p1489_p0 = pnand %p1493_p10, %p2456_p13 }
 0x29d   : > { %p1490_p1 = pneg %p1489_p0 }
 0x29f   : > { %1886 = dma.done.wait (%p1490_p1), %s1188_s10, 1024  }
 0x2a0   : > { %1888 = vsyncadd (%p1490_p1), %s1188_s10, 4294966272  ;;  %s22_s22 = sadd.s32 1, %s1931_s22   ;;  %s2457_s18 = sld [smem:[#allocation13_spill]] }
 0x2a1   : > { %p19_p4 = scmp.ge.s32.totalorder %s22_s22, 10   ;;  %s2458_s14 = sld [smem:[#allocation20_spill]] }
 0x2a2   : > { %s2459_s11 = sld [smem:[#allocation14_spill]]  ;;  %s2465_s12 = smov %s1895_s13 }
 0x2a3   : > { %s2460_s17 = sld [smem:[#allocation21_spill]]  ;;  %s2467_s15 = smov %s1907_s16 }
 0x2a4   : > { %s2461_s4 = sld [smem:[#allocation16_spill]] }
 0x2a5   : > { %s2462_s19 = sld [smem:[#allocation17_spill]] }
 0x2a6   : > { %s2463_s20 = sld [smem:[#allocation18_spill]]  ;;  %s2466_s13 = smov %s2457_s18 }
 0x2a7   : > { %s2464_s21 = sld [smem:[#allocation19_spill]]  ;;  %21 = sbr.rel (!%p19_p4) target bundleno = 15 (0xf), region = 109 }
 0x2a8   : > { %s2468_s16 = smov %s2459_s11 }
 0x2aa   : > { %s2469_s18 = smov %s2461_s4 }
 0x2ac   :  { %1193 = vsyncpa [#allocation4], 1 }
 0x2ad   :  { %1195 = vsyncpa [#allocation4 + $0x1], 1 }
 0x2ae   :  { %1196 = vsyncpa [#allocation7], 1 }
 0x2af   :  { %1198 = vsyncpa [#allocation7 + $0x1], 1 }
 0x2b0   :  { %1199 = vsyncpa [#allocation5], 1 }
 0x2b1   :  { %1201 = vsyncpa [#allocation5 + $0x1], 1 }

</bundles_post_ra>
